<compile_context>
chip_gen: v6e
topology: v6e:2x2x1
jax: 0.10.0
libtpu: 0.0.40
codegen_flags: <defaults>
</compile_context>

<pallas_src>
import functools

import jax
import jax.numpy as jnp
from jax.experimental import pallas as pl
from jax.experimental.pallas import tpu as pltpu


def dqm_mlp_kernel(x_ref, w0_ref, b0_ref, w1_ref, b1_ref, w2_ref, b2_ref,
                   o_ref):
    """One batch tile of the whole MLP: two fused matmul+bias+ReLU layers and
    the output matmul+bias. Weights arrive already in bf16; biases are f32."""
    # input layer + ReLU (bf16 MXU, f32 accumulate, f32 epilogue)
    x = x_ref[...].astype(jnp.bfloat16)
    h = jnp.dot(x, w0_ref[...], preferred_element_type=jnp.float32)
    h = jnp.maximum(h + b0_ref[...], 0.0)
    # hidden layer (depth - 1 == 1) + ReLU
    h = jnp.dot(h.astype(jnp.bfloat16), w1_ref[...],
                preferred_element_type=jnp.float32)
    h = jnp.maximum(h + b1_ref[...], 0.0)
    # output layer (no activation); block last dim == out_dim (no lane padding)
    out = jnp.dot(h.astype(jnp.bfloat16), w2_ref[...],
                  preferred_element_type=jnp.float32)
    o_ref[...] = (out + b2_ref[...]).astype(o_ref.dtype)


def _choose_batch_tile(batch, tile_b):
    """Batch tile: multiple of 8 sublanes, large enough to amortize the
    ~0.35us per-step overhead, and (for batch > 64) an even step count >= 2
    so v7x's two TensorCores both get balanced work."""
    ceil8 = lambda n: ((n + 7) // 8) * 8
    if batch <= 64:
        return ceil8(batch)                      # single small step
    tb = min(int(tile_b), ceil8(pl.cdiv(batch, 2)))
    tb = max(8, (tb // 8) * 8)
    steps = pl.cdiv(batch, tb)
    if steps > 1 and steps % 2 == 1:             # prefer an even step count
        tb = max(8, ceil8(pl.cdiv(batch, steps + 1)))
    return tb


@functools.partial(jax.jit, static_argnames=("tile_b",))
def dqm_forward(x, w0, b0, w1, b1, w2, b2, *, tile_b=4096):
    batch, in_dim = x.shape
    hid = w0.shape[1]
    out_dim = w2.shape[1]

    tb = _choose_batch_tile(batch, tile_b)
    grid = (pl.cdiv(batch, tb),)
    const = lambda i: (0, 0)

    flops = 2 * batch * (in_dim * hid + hid * hid + hid * out_dim)
    bytes_accessed = (x.size * x.dtype.itemsize
                      + batch * out_dim * 4
                      + (w0.size + w1.size + w2.size) * w0.dtype.itemsize
                      + (b0.size + b1.size + b2.size) * 4)

    return pl.pallas_call(
        dqm_mlp_kernel,
        out_shape=jax.ShapeDtypeStruct((batch, out_dim), jnp.float32),
        grid=grid,
        in_specs=[
            pl.BlockSpec((tb, in_dim), lambda i: (i, 0)),   # x tile (pipelined)
            pl.BlockSpec((in_dim, hid), const),             # w0 (VMEM resident)
            pl.BlockSpec((1, hid), const),                  # b0
            pl.BlockSpec((hid, hid), const),                # w1
            pl.BlockSpec((1, hid), const),                  # b1
            pl.BlockSpec((hid, out_dim), const),            # w2
            pl.BlockSpec((1, out_dim), const),              # b2
        ],
        out_specs=pl.BlockSpec((tb, out_dim), lambda i: (i, 0)),
        compiler_params=pltpu.CompilerParams(
            dimension_semantics=("parallel",),
            vmem_limit_bytes=32 * 1024 * 1024,
        ),
        cost_estimate=pl.CostEstimate(
            flops=flops, transcendentals=0, bytes_accessed=bytes_accessed),
    )(x, w0, b0, w1, b1, w2, b2)


def prepare_params(w0, b0, w1, b1, w2, b2):
    """One-time (outside the jitted forward) weight cast to bf16; biases stay
    f32 as (1, F) rows for the f32 epilogue."""
    return (w0.astype(jnp.bfloat16), b0,
            w1.astype(jnp.bfloat16), b1,
            w2.astype(jnp.bfloat16), b2)


def init_linear(key, fan_in, fan_out):
    """Deterministic PyTorch-style Linear init: U(-1/sqrt(fan_in), 1/sqrt(fan_in)).
    Weight is returned as (fan_in, fan_out) -- transposed vs. torch."""
    kw, kb = jax.random.split(key)
    bound = 1.0 / jnp.sqrt(fan_in)
    w = jax.random.uniform(kw, (fan_in, fan_out), jnp.float32, -bound, bound)
    b = jax.random.uniform(kb, (1, fan_out), jnp.float32, -bound, bound)
    return w, b


def reference_forward_f32(x, w0, b0, w1, b1, w2, b2):
    h = jnp.maximum(x @ w0 + b0, 0.0)
    h = jnp.maximum(h @ w1 + b1, 0.0)
    return h @ w2 + b2


@jax.jit
def reference_forward_bf16(x, w0, b0, w1, b1, w2, b2):
    """Same mixed precision as the kernel: bf16 matmuls, f32 accumulate."""
    bf = jnp.bfloat16
    h = jnp.dot(x.astype(bf), w0.astype(bf), preferred_element_type=jnp.float32)
    h = jnp.maximum(h + b0, 0.0)
    h = jnp.dot(h.astype(bf), w1.astype(bf), preferred_element_type=jnp.float32)
    h = jnp.maximum(h + b1, 0.0)
    out = jnp.dot(h.astype(bf), w2.astype(bf), preferred_element_type=jnp.float32)
    return out + b2


if __name__ == "__main__":
    input_dim, hidden_dim, output_dim = 16, 32, 4

    key = jax.random.PRNGKey(0)
    kx, k0, k1, k2, kx2 = jax.random.split(key, 5)

    w0, b0 = init_linear(k0, input_dim, hidden_dim)   # input_layer
    w1, b1 = init_linear(k1, hidden_dim, hidden_dim)  # hidden_layers[0]
    w2, b2 = init_linear(k2, hidden_dim, output_dim)  # output_layer
    params = prepare_params(w0, b0, w1, b1, w2, b2)

    # Case 1: medium batch -> 2 grid steps of 128 rows (both v7x TCs busy).
    x = jax.random.normal(kx, (256, input_dim), jnp.float32)
    out = jax.block_until_ready(dqm_forward(x, *params))
    assert out.shape == (256, output_dim)
    ref_bf = reference_forward_bf16(x, w0, b0, w1, b1, w2, b2)
    ref_32 = reference_forward_f32(x, w0, b0, w1, b1, w2, b2)
    assert jnp.allclose(out, ref_bf, atol=2e-3, rtol=2e-3)
    assert jnp.allclose(out, ref_32, atol=5e-2, rtol=5e-2)

    # Case 2: small, ragged batch exercises the partial-block (no-pad) path.
    x2 = jax.random.normal(kx2, (20, input_dim), jnp.float32)
    out2 = jax.block_until_ready(dqm_forward(x2, *params))
    assert out2.shape == (20, output_dim)
    ref2_bf = reference_forward_bf16(x2, w0, b0, w1, b1, w2, b2)
    ref2_32 = reference_forward_f32(x2, w0, b0, w1, b1, w2, b2)
    assert jnp.allclose(out2, ref2_bf, atol=2e-3, rtol=2e-3)
    assert jnp.allclose(out2, ref2_32, atol=5e-2, rtol=5e-2)

    print("KERNEL_OK")
</pallas_src>

<mosaic_0001>
module attributes {stable_mosaic.version = 11 : i64} {
  func.func @dqm_mlp_kernel(%arg0: i32, %arg1: memref<128x16xf32, #tpu.memory_space<vmem>>, %arg2: memref<16x32xbf16, #tpu.memory_space<vmem>>, %arg3: memref<1x32xf32, #tpu.memory_space<vmem>>, %arg4: memref<32x32xbf16, #tpu.memory_space<vmem>>, %arg5: memref<1x32xf32, #tpu.memory_space<vmem>>, %arg6: memref<32x4xbf16, #tpu.memory_space<vmem>>, %arg7: memref<1x4xf32, #tpu.memory_space<vmem>>, %arg8: memref<128x4xf32, #tpu.memory_space<vmem>>) attributes {dimension_semantics = [#tpu.dimension_semantics<parallel>], iteration_bounds = array<i64: 2>, scalar_prefetch = 0 : i64, scratch_operands = 0 : i64, tpu.core_type = #tpu.core_type<tc>, window_params = [{transform_indices = @transform_0, window_bounds = array<i64: 128, 16>}, {pipeline_mode = #tpu.pipeline_mode<synchronous>, transform_indices = @transform_1, window_bounds = array<i64: 16, 32>}, {pipeline_mode = #tpu.pipeline_mode<synchronous>, transform_indices = @transform_2, window_bounds = array<i64: 1, 32>}, {pipeline_mode = #tpu.pipeline_mode<synchronous>, transform_indices = @transform_3, window_bounds = array<i64: 32, 32>}, {pipeline_mode = #tpu.pipeline_mode<synchronous>, transform_indices = @transform_4, window_bounds = array<i64: 1, 32>}, {pipeline_mode = #tpu.pipeline_mode<synchronous>, transform_indices = @transform_5, window_bounds = array<i64: 32, 4>}, {pipeline_mode = #tpu.pipeline_mode<synchronous>, transform_indices = @transform_6, window_bounds = array<i64: 1, 4>}, {transform_indices = @transform_7, window_bounds = array<i64: 128, 4>}]} {
    %c0 = arith.constant 0 : index
    %c0_0 = arith.constant 0 : index
    %0 = vector.load %arg1[%c0, %c0_0] : memref<128x16xf32, #tpu.memory_space<vmem>>, vector<128x16xf32>
    %1 = arith.truncf %0 : vector<128x16xf32> to vector<128x16xbf16>
    %c0_1 = arith.constant 0 : index
    %c0_2 = arith.constant 0 : index
    %2 = vector.load %arg2[%c0_1, %c0_2] : memref<16x32xbf16, #tpu.memory_space<vmem>>, vector<16x32xbf16>
    %cst = arith.constant dense<0.000000e+00> : vector<128x32xf32>
    %3 = tpu.matmul %1, %2, %cst {dimension_numbers = #tpu.dot_dimension_numbers<[1], [0], [0], [1], [0, 0, 1, 1], [], []>} : vector<128x16xbf16>, vector<16x32xbf16>, vector<128x32xf32> -> vector<128x32xf32>
    %c0_3 = arith.constant 0 : index
    %c0_4 = arith.constant 0 : index
    %4 = vector.load %arg3[%c0_3, %c0_4] : memref<1x32xf32, #tpu.memory_space<vmem>>, vector<1x32xf32>
    %5 = vector.broadcast %4 : vector<1x32xf32> to vector<128x32xf32>
    %6 = arith.addf %3, %5 : vector<128x32xf32>
    %cst_5 = arith.constant 0.000000e+00 : f32
    %7 = vector.broadcast %cst_5 : f32 to vector<128x32xf32>
    %8 = arith.maximumf %6, %7 : vector<128x32xf32>
    %9 = arith.truncf %8 : vector<128x32xf32> to vector<128x32xbf16>
    %c0_6 = arith.constant 0 : index
    %c0_7 = arith.constant 0 : index
    %10 = vector.load %arg4[%c0_6, %c0_7] : memref<32x32xbf16, #tpu.memory_space<vmem>>, vector<32x32xbf16>
    %cst_8 = arith.constant dense<0.000000e+00> : vector<128x32xf32>
    %11 = tpu.matmul %9, %10, %cst_8 {dimension_numbers = #tpu.dot_dimension_numbers<[1], [0], [0], [1], [0, 0, 1, 1], [], []>} : vector<128x32xbf16>, vector<32x32xbf16>, vector<128x32xf32> -> vector<128x32xf32>
    %c0_9 = arith.constant 0 : index
    %c0_10 = arith.constant 0 : index
    %12 = vector.load %arg5[%c0_9, %c0_10] : memref<1x32xf32, #tpu.memory_space<vmem>>, vector<1x32xf32>
    %13 = vector.broadcast %12 : vector<1x32xf32> to vector<128x32xf32>
    %14 = arith.addf %11, %13 : vector<128x32xf32>
    %cst_11 = arith.constant 0.000000e+00 : f32
    %15 = vector.broadcast %cst_11 : f32 to vector<128x32xf32>
    %16 = arith.maximumf %14, %15 : vector<128x32xf32>
    %17 = arith.truncf %16 : vector<128x32xf32> to vector<128x32xbf16>
    %c0_12 = arith.constant 0 : index
    %c0_13 = arith.constant 0 : index
    %18 = vector.load %arg6[%c0_12, %c0_13] : memref<32x4xbf16, #tpu.memory_space<vmem>>, vector<32x4xbf16>
    %cst_14 = arith.constant dense<0.000000e+00> : vector<128x4xf32>
    %19 = tpu.matmul %17, %18, %cst_14 {dimension_numbers = #tpu.dot_dimension_numbers<[1], [0], [0], [1], [0, 0, 1, 1], [], []>} : vector<128x32xbf16>, vector<32x4xbf16>, vector<128x4xf32> -> vector<128x4xf32>
    %c0_15 = arith.constant 0 : index
    %c0_16 = arith.constant 0 : index
    %20 = vector.load %arg7[%c0_15, %c0_16] : memref<1x4xf32, #tpu.memory_space<vmem>>, vector<1x4xf32>
    %21 = vector.broadcast %20 : vector<1x4xf32> to vector<128x4xf32>
    %22 = arith.addf %19, %21 : vector<128x4xf32>
    %c0_17 = arith.constant 0 : index
    %c0_18 = arith.constant 0 : index
    %23 = vector.load %arg8[%c0_17, %c0_18] : memref<128x4xf32, #tpu.memory_space<vmem>>, vector<128x4xf32>
    tpu.vector_store %arg8[%c0_17, %c0_18], %22 {strides = array<i32>} : memref<128x4xf32, #tpu.memory_space<vmem>>, vector<128x4xf32>,
    return
  }
  func.func @transform_0(%arg0: i32) -> (i32, i32) {
    %c0_i32 = arith.constant 0 : i32
    %c0_i32_0 = arith.constant 0 : i32
    return %arg0, %c0_i32 : i32, i32
  }
  func.func @transform_1(%arg0: i32) -> (i32, i32) {
    %c0_i32 = arith.constant 0 : i32
    %c0_i32_0 = arith.constant 0 : i32
    %c0_i32_1 = arith.constant 0 : i32
    return %c0_i32, %c0_i32_0 : i32, i32
  }
  func.func @transform_2(%arg0: i32) -> (i32, i32) {
    %c0_i32 = arith.constant 0 : i32
    %c0_i32_0 = arith.constant 0 : i32
    %c0_i32_1 = arith.constant 0 : i32
    return %c0_i32, %c0_i32_0 : i32, i32
  }
  func.func @transform_3(%arg0: i32) -> (i32, i32) {
    %c0_i32 = arith.constant 0 : i32
    %c0_i32_0 = arith.constant 0 : i32
    %c0_i32_1 = arith.constant 0 : i32
    return %c0_i32, %c0_i32_0 : i32, i32
  }
  func.func @transform_4(%arg0: i32) -> (i32, i32) {
    %c0_i32 = arith.constant 0 : i32
    %c0_i32_0 = arith.constant 0 : i32
    %c0_i32_1 = arith.constant 0 : i32
    return %c0_i32, %c0_i32_0 : i32, i32
  }
  func.func @transform_5(%arg0: i32) -> (i32, i32) {
    %c0_i32 = arith.constant 0 : i32
    %c0_i32_0 = arith.constant 0 : i32
    %c0_i32_1 = arith.constant 0 : i32
    return %c0_i32, %c0_i32_0 : i32, i32
  }
  func.func @transform_6(%arg0: i32) -> (i32, i32) {
    %c0_i32 = arith.constant 0 : i32
    %c0_i32_0 = arith.constant 0 : i32
    %c0_i32_1 = arith.constant 0 : i32
    return %c0_i32, %c0_i32_0 : i32, i32
  }
  func.func @transform_7(%arg0: i32) -> (i32, i32) {
    %c0_i32 = arith.constant 0 : i32
    %c0_i32_0 = arith.constant 0 : i32
    return %arg0, %c0_i32 : i32, i32
  }
}

</mosaic_0001>

<bundles_post_ra>
// kernel: dqm_forward.1
= control target key start
LH: loop header
LB: loop body
LE: loop exit
PB: predicated region body
PF: predicated region fallthrough
CT: control target
= control target key end

     0   :  { %s1047_s24 = smov 0   ;;  %s1153_s0 = inlined_call_operand.vmem [shape: f32[256,16], index: 0, kind: input, shape index: {}]   ;;  %s1154_s1 = inlined_call_operand.vmem [shape: bf16[16,32], index: 1, kind: input, shape index: {}]   ;;  %s1155_s2 = inlined_call_operand.vmem [shape: f32[1,32], index: 2, kind: input, shape index: {}]   ;;  %s1156_s3 = inlined_call_operand.vmem [shape: bf16[32,32], index: 3, kind: input, shape index: {}]   ;;  %s1157_s4 = inlined_call_operand.vmem [shape: f32[1,32], index: 4, kind: input, shape index: {}]   ;;  %s1158_s5 = inlined_call_operand.vmem [shape: bf16[32,4], index: 5, kind: input, shape index: {}]   ;;  %s1159_s6 = inlined_call_operand.vmem [shape: f32[1,4], index: 6, kind: input, shape index: {}]   ;;  %s1160_s7 = inlined_call_operand.vmem [shape: f32[256,4], index: 7, kind: output, shape index: {}]  }
   0x1 LB: > { %s854_s25 = sadd.s32 4294967295, %s1005_s24   ;;  %p858_p0 = scmp.ge.s32.totalorder %s1005_s24, 1  ;;  %s1005_s24 = sphi %s1047_s24, %s17_s24  }
   0x2   : > { %p238_p1 = scmp.lt.s32.totalorder %s1005_s24, 3 }
   0x4   : > { %p239_p2 = pnand %p858_p0, %p238_p1 }
   0x5   : > { %s859_s28 = sshll.u32 (!%p239_p2), %s854_s25, 4 }
   0x6   : > { %242 = sbr.rel (%p239_p2) target bundleno = 656 (0x290), region = 48  ;;  %p271_p3 = scmp.lt.s32.totalorder (!%p239_p2), %s859_s28, 31 }
   0xb   : > { %v994_v0 = vld [vmem:[%s1154_s1] sm:$0xff]   ;;  %v995_v1 = vld [vmem:[%s1156_s3 + $0x8] sm:$0xff]   ;;  %s1162_s28 = smov (!%p271_p3, %s859_s28), 31  ;;  %vm322_vm0 = vcmask 130048   ;;  %vm491_vm1 = vcmask 261120   ;;  %vm781_vm2 = vcmask 31744  }
   0xc   : > { %926 = vmatprep.subr.bf16.mxu0 %v994_v0  ;;  %984 = vmatprep.subr.bf16.mxu1 %v994_v0  ;;  %s860_s8 = sshll.u32 %s1162_s28, 3  ;;  %v996_v26 = vld [vmem:[%s1156_s3] sm:$0xff]   ;;  %v997_v27 = vld [vmem:[%s1158_s5 + $0x8] sm:$0xff]  }
   0xd   : > { %927 = vmatpush3.bf16.msra.mxu0 %v994_v0  ;;  %985 = vmatpush3.bf16.msra.mxu1 %v994_v0  ;;  %s274_s11 = scalar_lea.vmem %s1153_s0, %s860_s8  ;;  %v863_v30 = vld [vmem:[%s1155_s2] ss:$0 sm:$0xff]  ;;  %s1116_s27 = scalar_lea.vmem %s1160_s7, %s860_s8 }
   0xe   : > { %944 = vmatprep.subr.bf16.mxu1 %v995_v1  ;;  %v283_v2 = vld [vmem:[%s274_s11] sm:$0xff]  ;;  %v284_v3 = vld [vmem:[%s274_s11 + $0x8] sm:$0xff]  ;;  %v285_v4 = vld [vmem:[%s274_s11 + $0x10] sm:$0xff]  ;;  %964 = vmatprep.subr.bf16.mxu0 %v997_v27 }
   0xf   : > { %v299_v5 = vpack.c.bf16 %v284_v3, %v283_v2  ;;  %v286_v6 = vld [vmem:[%s274_s11 + $0x18] sm:$0xff]  ;;  %v287_v7 = vld [vmem:[%s274_s11 + $0x20] sm:$0xff]  ;;  %v288_v8 = vld [vmem:[%s274_s11 + $0x28] sm:$0xff] }
  0x10   : > { %v300_v9 = vpack.c.bf16 %v286_v6, %v285_v4  ;;  %v301_v10 = vpack.c.bf16 %v288_v8, %v287_v7  ;;  %v291_v11 = vld [vmem:[%s274_s11 + $0x40] sm:$0xff]  ;;  %v292_v12 = vld [vmem:[%s274_s11 + $0x48] sm:$0xff]  ;;  %v293_v13 = vld [vmem:[%s274_s11 + $0x50] sm:$0xff] }
  0x11   : > { %928 = vmatprep.mubr.msk.bf16.mxu0 %vm322_vm0, %v299_v5  ;;  %v294_v14 = vld [vmem:[%s274_s11 + $0x58] sm:$0xff]  ;;  %v303_v15 = vpack.c.bf16 %v292_v12, %v291_v11  ;;  %v295_v17 = vld [vmem:[%s274_s11 + $0x60] sm:$0xff]  ;;  %v296_v18 = vld [vmem:[%s274_s11 + $0x68] sm:$0xff] }
  0x12   : > { %929 = vmatmul.mubr.msk.bf16.vlgmr.msra.gmra.mxu0 %vm322_vm0, %v300_v9  ;;  %v304_v16 = vpack.c.bf16 %v294_v14, %v293_v13  ;;  %v289_v19 = vld [vmem:[%s274_s11 + $0x30] sm:$0xff]  ;;  %v290_v20 = vld [vmem:[%s274_s11 + $0x38] sm:$0xff]  ;;  %v305_v21 = vpack.c.bf16 %v296_v18, %v295_v17 }
  0x13   : > { %932 = vmatprep.mubr.msk.bf16.mxu0 %vm322_vm0, %v301_v10  ;;  %936 = vmatprep.mubr.msk.bf16.mxu1 %vm322_vm0, %v303_v15  ;;  %v302_v22 = vpack.c.bf16 %v290_v20, %v289_v19  ;;  %v297_v23 = vld [vmem:[%s274_s11 + $0x70] sm:$0xff]  ;;  %v298_v24 = vld [vmem:[%s274_s11 + $0x78] sm:$0xff] }
  0x14   : > { %937 = vmatmul.mubr.msk.bf16.vlgmr.msra.gmra.mxu1 %vm322_vm0, %v304_v16  ;;  %v306_v25 = vpack.c.bf16 %v298_v24, %v297_v23  ;;  %965 = vmatpush3.bf16.msra.mxu0 %v997_v27  ;;  %v873_v24 = vld [vmem:[%s1157_s4] ss:$0 sm:$0xff] }
  0x15   : > { %940 = vmatprep.mubr.msk.bf16.mxu1 %vm322_vm0, %v305_v21  ;;  %945 = vmatpush3.bf16.msra.mxu1 %v995_v1  ;;  %v998_v21 = vld [vmem:[%s1158_s5] sm:$0xff]  }
  0x16   : > { %946 = vmatprep.subr.bf16.mxu1 %v996_v26  ;;  %966 = vmatprep.subr.bf16.mxu0 %v998_v21 }
  0x18   : > { %967 = vmatpush3.bf16.msra.mxu0 %v998_v21 }
  0x19   : > { %947 = vmatpush3.bf16.msra.mxu1 %v996_v26 }
  0x1a   : > { %933 = vmatmul.mubr.msk.bf16.gmra.mxu0 %vm322_vm0, %v302_v22 }
  0x1c   : > { %941 = vmatmul.mubr.msk.bf16.gmra.mxu1 %vm322_vm0, %v306_v25 }
  0xd2   : > { %v930_v28 = vpop.f32.mrf.mxu0 }
  0xd3   : > { %v390_v36 = vadd.f32 %v930_v28, %v863_v30 }
  0xd4   : > { %v381_v29 = vpop.f32.mrf.mxu0  ;;  %v938_v31 = vpop.f32.mrf.mxu1 }
  0xd5   : > { %v382_v33 = vadd.f32 %v863_v30, %v381_v29  ;;  %v446_v45 = vmax.f32 %v390_v36, 0.0  ;;  %v422_v7 = vadd.f32 %v938_v31, %v863_v30 }
  0xd6   : > { %v931_v32 = vpop.f32.mrf.mxu0  ;;  %v413_v35 = vpop.f32.mrf.mxu1 }
  0xd7   : > { %v393_v34 = vadd.f32 %v931_v32, %v863_v30  ;;  %v444_v42 = vmax.f32 %v382_v33, 0.0  ;;  %v414_v48 = vadd.f32 %v863_v30, %v413_v35  ;;  %v454_v12 = vmax.f32 %v422_v7, 0.0 }
  0xd8   : > { %v384_v37 = vpop.f32.mrf.mxu0  ;;  %v939_v39 = vpop.f32.mrf.mxu1 }
  0xd9   : > { %v385_v38 = vadd.f32 %v863_v30, %v384_v37  ;;  %v447_v40 = vmax.f32 %v393_v34, 0.0  ;;  %v452_v58 = vmax.f32 %v414_v48, 0.0  ;;  %v425_v9 = vadd.f32 %v939_v39, %v863_v30 }
  0xda   : > { %v934_v41 = vpop.f32.mrf.mxu0  ;;  %v416_v44 = vpop.f32.mrf.mxu1 }
  0xdb   : > { %v445_v43 = vmax.f32 %v385_v38, 0.0  ;;  %v417_v49 = vadd.f32 %v863_v30, %v416_v44  ;;  %v461_v51 = vpack.c.bf16 %v447_v40, %v446_v45  ;;  %v406_v56 = vadd.f32 %v934_v41, %v863_v30 }
  0xdc   : > { %v397_v46 = vpop.f32.mrf.mxu0  ;;  %v942_v50 = vpop.f32.mrf.mxu1  ;;  %v455_v13 = vmax.f32 %v425_v9, 0.0 }
  0xdd   : > { %v460_v47 = vpack.c.bf16 %v445_v43, %v444_v42  ;;  %v398_v53 = vadd.f32 %v863_v30, %v397_v46  ;;  %v453_v60 = vmax.f32 %v417_v49, 0.0  ;;  %v450_v2 = vmax.f32 %v406_v56, 0.0 }
  0xde   : > { %v935_v52 = vpop.f32.mrf.mxu0  ;;  %v429_v55 = vpop.f32.mrf.mxu1  ;;  %v465_v15 = vpack.c.bf16 %v455_v13, %v454_v12  ;;  %v438_v16 = vadd.f32 %v942_v50, %v863_v30 }
  0xdf   : > { %v409_v54 = vadd.f32 %v935_v52, %v863_v30  ;;  %948 = vmatprep.mubr.msk.bf16.mxu1 %vm491_vm1, %v460_v47  ;;  %v448_v63 = vmax.f32 %v398_v53, 0.0  ;;  %v464_v4 = vpack.c.bf16 %v453_v60, %v452_v58  ;;  %v430_v5 = vadd.f32 %v863_v30, %v429_v55 }
  0xe0   : > { %v400_v57 = vpop.f32.mrf.mxu0  ;;  %949 = vmatmul.mubr.msk.bf16.vlgmr.msra.gmra.mxu1 %vm491_vm1, %v461_v51  ;;  %v943_v61 = vpop.f32.mrf.mxu1  ;;  %v458_v18 = vmax.f32 %v438_v16, 0.0 }
  0xe1   : > { %v401_v59 = vadd.f32 %v863_v30, %v400_v57  ;;  %v451_v62 = vmax.f32 %v409_v54, 0.0  ;;  %v456_v10 = vmax.f32 %v430_v5, 0.0  ;;  %v441_v17 = vadd.f32 %v943_v61, %v863_v30 }
  0xe2   : > { %v432_v1 = vpop.f32.mrf.mxu1 }
  0xe3   : > { %v449_v0 = vmax.f32 %v401_v59, 0.0  ;;  %v433_v6 = vadd.f32 %v863_v30, %v432_v1  ;;  %v463_v8 = vpack.c.bf16 %v451_v62, %v450_v2  ;;  %v459_v19 = vmax.f32 %v441_v17, 0.0 }
  0xe5   : > { %v462_v3 = vpack.c.bf16 %v449_v0, %v448_v63  ;;  %v457_v11 = vmax.f32 %v433_v6, 0.0  ;;  %v467_v20 = vpack.c.bf16 %v459_v19, %v458_v18 }
  0xe7   : > { %952 = vmatprep.mubr.msk.bf16.mxu1 %vm491_vm1, %v462_v3  ;;  %v466_v14 = vpack.c.bf16 %v457_v11, %v456_v10 }
  0xe8   : > { %953 = vmatmul.mubr.msk.bf16.gmra.mxu1 %vm491_vm1, %v463_v8 }
  0xe9   : > { %956 = vmatprep.mubr.msk.bf16.mxu1 %vm491_vm1, %v464_v4 }
  0xf0   : > { %957 = vmatmul.mubr.msk.bf16.gmra.mxu1 %vm491_vm1, %v465_v15  ;;  %v884_v15 = vld [vmem:[%s1159_s6] ss:$0 sm:$0xff] }
  0xf1   : > { %960 = vmatprep.mubr.msk.bf16.mxu1 %vm491_vm1, %v466_v14 }
  0xf8   : > { %961 = vmatmul.mubr.msk.bf16.gmra.mxu1 %vm491_vm1, %v467_v20 }
 0x1a0   : > { %v950_v22 = vpop.f32.mrf.mxu1 }
 0x1a1   : > { %v559_v28 = vadd.f32 %v950_v22, %v873_v24 }
 0x1a2   : > { %v550_v23 = vpop.f32.mrf.mxu1 }
 0x1a3   : > { %v551_v26 = vadd.f32 %v873_v24, %v550_v23  ;;  %v615_v35 = vmax.f32 %v559_v28, 0.0 }
 0x1a4   : > { %v951_v25 = vpop.f32.mrf.mxu1 }
 0x1a5   : > { %v562_v27 = vadd.f32 %v951_v25, %v873_v24  ;;  %v613_v33 = vmax.f32 %v551_v26, 0.0 }
 0x1a6   : > { %v553_v29 = vpop.f32.mrf.mxu1 }
 0x1a7   : > { %v554_v30 = vadd.f32 %v873_v24, %v553_v29  ;;  %v616_v31 = vmax.f32 %v562_v27, 0.0 }
 0x1a8   : > { %v954_v32 = vpop.f32.mrf.mxu1 }
 0x1a9   : > { %v614_v34 = vmax.f32 %v554_v30, 0.0  ;;  %v630_v38 = vpack.c.bf16 %v616_v31, %v615_v35  ;;  %v575_v42 = vadd.f32 %v954_v32, %v873_v24 }
 0x1aa   : > { %v566_v36 = vpop.f32.mrf.mxu1 }
 0x1ab   : > { %v629_v37 = vpack.c.bf16 %v614_v34, %v613_v33  ;;  %v567_v40 = vadd.f32 %v873_v24, %v566_v36  ;;  %v619_v49 = vmax.f32 %v575_v42, 0.0 }
 0x1ac   : > { %v955_v39 = vpop.f32.mrf.mxu1 }
 0x1ad   : > { %v578_v41 = vadd.f32 %v955_v39, %v873_v24  ;;  %968 = vmatprep.mubr.msk.bf16.mxu0 %vm491_vm1, %v629_v37  ;;  %v617_v47 = vmax.f32 %v567_v40, 0.0 }
 0x1ae   : > { %v569_v43 = vpop.f32.mrf.mxu1  ;;  %969 = vmatmul.mubr.msk.bf16.vlgmr.msra.gmra.mxu0 %vm491_vm1, %v630_v38 }
 0x1af   : > { %v570_v44 = vadd.f32 %v873_v24, %v569_v43  ;;  %v620_v45 = vmax.f32 %v578_v41, 0.0 }
 0x1b0   : > { %v958_v46 = vpop.f32.mrf.mxu1 }
 0x1b1   : > { %v618_v48 = vmax.f32 %v570_v44, 0.0  ;;  %v632_v52 = vpack.c.bf16 %v620_v45, %v619_v49  ;;  %v591_v56 = vadd.f32 %v958_v46, %v873_v24 }
 0x1b2   : > { %v582_v50 = vpop.f32.mrf.mxu1 }
 0x1b3   : > { %v631_v51 = vpack.c.bf16 %v618_v48, %v617_v47  ;;  %v583_v54 = vadd.f32 %v873_v24, %v582_v50  ;;  %v623_v63 = vmax.f32 %v591_v56, 0.0 }
 0x1b4   : > { %v959_v53 = vpop.f32.mrf.mxu1 }
 0x1b5   : > { %v594_v55 = vadd.f32 %v959_v53, %v873_v24  ;;  %972 = vmatprep.mubr.msk.bf16.mxu0 %vm491_vm1, %v631_v51  ;;  %v621_v61 = vmax.f32 %v583_v54, 0.0 }
 0x1b6   : > { %v585_v57 = vpop.f32.mrf.mxu1  ;;  %973 = vmatmul.mubr.msk.bf16.gmra.mxu0 %vm491_vm1, %v632_v52 }
 0x1b7   : > { %v586_v58 = vadd.f32 %v873_v24, %v585_v57  ;;  %v624_v59 = vmax.f32 %v594_v55, 0.0 }
 0x1b8   : > { %v962_v60 = vpop.f32.mrf.mxu1 }
 0x1b9   : > { %v622_v62 = vmax.f32 %v586_v58, 0.0  ;;  %v634_v2 = vpack.c.bf16 %v624_v59, %v623_v63  ;;  %v607_v6 = vadd.f32 %v962_v60, %v873_v24 }
 0x1ba   : > { %v598_v0 = vpop.f32.mrf.mxu1 }
 0x1bb   : > { %v633_v1 = vpack.c.bf16 %v622_v62, %v621_v61  ;;  %v599_v4 = vadd.f32 %v873_v24, %v598_v0  ;;  %v627_v12 = vmax.f32 %v607_v6, 0.0 }
 0x1bc   : > { %v963_v3 = vpop.f32.mrf.mxu1 }
 0x1bd   : > { %v610_v5 = vadd.f32 %v963_v3, %v873_v24  ;;  %976 = vmatprep.mubr.msk.bf16.mxu0 %vm491_vm1, %v633_v1  ;;  %v625_v10 = vmax.f32 %v599_v4, 0.0 }
 0x1be   : > { %v601_v7 = vpop.f32.mrf.mxu1  ;;  %977 = vmatmul.mubr.msk.bf16.gmra.mxu0 %vm491_vm1, %v634_v2 }
 0x1bf   : > { %v602_v8 = vadd.f32 %v873_v24, %v601_v7  ;;  %v628_v9 = vmax.f32 %v610_v5, 0.0 }
 0x1c1   : > { %v626_v11 = vmax.f32 %v602_v8, 0.0  ;;  %v636_v14 = vpack.c.bf16 %v628_v9, %v627_v12 }
 0x1c3   : > { %v635_v13 = vpack.c.bf16 %v626_v11, %v625_v10 }
 0x1c5   : > { %980 = vmatprep.mubr.msk.bf16.mxu0 %vm491_vm1, %v635_v13 }
 0x1c6   : > { %981 = vmatmul.mubr.msk.bf16.gmra.mxu0 %vm491_vm1, %v636_v14 }
 0x26e   : > { %v970_v16 = vpop.f32.mrf.mxu0 }
 0x26f   : > { %v727_v17 = vadd.f32 %v970_v16, %v884_v15 }
 0x270   : > { %v718_v18 = vpop.f32.mrf.mxu0 }
 0x271   : > { %784 = vst.msk [vmem:[%s1116_s27 + $0x10] sm:$0xff] %vm781_vm2, %v727_v17  ;;  %v719_v19 = vadd.f32 %v884_v15, %v718_v18 }
 0x272   : > { %v971_v20 = vpop.f32.mrf.mxu0 }
 0x273   : > { %782 = vst.msk [vmem:[%s1116_s27] sm:$0xff] %vm781_vm2, %v719_v19  ;;  %v730_v21 = vadd.f32 %v971_v20, %v884_v15 }
 0x274   : > { %v721_v22 = vpop.f32.mrf.mxu0 }
 0x275   : > { %785 = vst.msk [vmem:[%s1116_s27 + $0x18] sm:$0xff] %vm781_vm2, %v730_v21  ;;  %v722_v23 = vadd.f32 %v884_v15, %v721_v22 }
 0x276   : > { %v974_v24 = vpop.f32.mrf.mxu0 }
 0x277   : > { %783 = vst.msk [vmem:[%s1116_s27 + $0x8] sm:$0xff] %vm781_vm2, %v722_v23  ;;  %v743_v25 = vadd.f32 %v974_v24, %v884_v15 }
 0x278   : > { %v734_v26 = vpop.f32.mrf.mxu0 }
 0x279   : > { %788 = vst.msk [vmem:[%s1116_s27 + $0x30] sm:$0xff] %vm781_vm2, %v743_v25  ;;  %v735_v27 = vadd.f32 %v884_v15, %v734_v26 }
 0x27a   : > { %v975_v28 = vpop.f32.mrf.mxu0 }
 0x27b   : > { %786 = vst.msk [vmem:[%s1116_s27 + $0x20] sm:$0xff] %vm781_vm2, %v735_v27  ;;  %v746_v29 = vadd.f32 %v975_v28, %v884_v15 }
 0x27c   : > { %v737_v30 = vpop.f32.mrf.mxu0 }
 0x27d   : > { %789 = vst.msk [vmem:[%s1116_s27 + $0x38] sm:$0xff] %vm781_vm2, %v746_v29  ;;  %v738_v31 = vadd.f32 %v884_v15, %v737_v30 }
 0x27e   : > { %v978_v32 = vpop.f32.mrf.mxu0 }
 0x27f   : > { %787 = vst.msk [vmem:[%s1116_s27 + $0x28] sm:$0xff] %vm781_vm2, %v738_v31  ;;  %v759_v33 = vadd.f32 %v978_v32, %v884_v15 }
 0x280   : > { %v750_v34 = vpop.f32.mrf.mxu0 }
 0x281   : > { %792 = vst.msk [vmem:[%s1116_s27 + $0x50] sm:$0xff] %vm781_vm2, %v759_v33  ;;  %v751_v35 = vadd.f32 %v884_v15, %v750_v34 }
 0x282   : > { %v979_v36 = vpop.f32.mrf.mxu0 }
 0x283   : > { %790 = vst.msk [vmem:[%s1116_s27 + $0x40] sm:$0xff] %vm781_vm2, %v751_v35  ;;  %v762_v37 = vadd.f32 %v979_v36, %v884_v15 }
 0x284   : > { %v753_v38 = vpop.f32.mrf.mxu0 }
 0x285   : > { %793 = vst.msk [vmem:[%s1116_s27 + $0x58] sm:$0xff] %vm781_vm2, %v762_v37  ;;  %v754_v39 = vadd.f32 %v884_v15, %v753_v38 }
 0x286   : > { %v982_v40 = vpop.f32.mrf.mxu0 }
 0x287   : > { %791 = vst.msk [vmem:[%s1116_s27 + $0x48] sm:$0xff] %vm781_vm2, %v754_v39  ;;  %v775_v41 = vadd.f32 %v982_v40, %v884_v15 }
 0x288   : > { %v766_v42 = vpop.f32.mrf.mxu0 }
 0x289   : > { %796 = vst.msk [vmem:[%s1116_s27 + $0x70] sm:$0xff] %vm781_vm2, %v775_v41  ;;  %v767_v43 = vadd.f32 %v884_v15, %v766_v42 }
 0x28a   : > { %v983_v44 = vpop.f32.mrf.mxu0 }
 0x28b   : > { %794 = vst.msk [vmem:[%s1116_s27 + $0x60] sm:$0xff] %vm781_vm2, %v767_v43  ;;  %v778_v45 = vadd.f32 %v983_v44, %v884_v15 }
 0x28c   : > { %v769_v46 = vpop.f32.mrf.mxu0 }
 0x28d   : > { %797 = vst.msk [vmem:[%s1116_s27 + $0x78] sm:$0xff] %vm781_vm2, %v778_v45  ;;  %v770_v47 = vadd.f32 %v884_v15, %v769_v46 }
 0x28f   : > { %795 = vst.msk [vmem:[%s1116_s27 + $0x68] sm:$0xff] %vm781_vm2, %v770_v47 }
 0x290 PF: > { %s17_s24 = sadd.s32 1, %s1005_s24  }
 0x291   : > { %p14_p4 = scmp.ge.s32.totalorder %s17_s24, 4  }
 0x293   :  { %16 = sbr.rel (!%p14_p4) target bundleno = 1 (0x1), region = 78 }

</bundles_post_ra>
